<compile_context>
chip_gen: v7x
topology: tpu7x:2x2x1
jax: 0.10.0
libtpu: 0.0.40
codegen_flags: <defaults>
</compile_context>

<pallas_src>
import math

import jax
import jax.numpy as jnp
from jax import lax
from jax.experimental import pallas as pl
from jax.experimental.pallas import tpu as pltpu  # noqa: F401 (kept for parity)

# ---- hyper-parameters (small, but shape-consistent with the module) --------
VOCAB = 100
EMBED = 32          # hparams['embed_size']
NHEAD = 4           # hparams['nhead']
HEAD_DIM = EMBED // NHEAD
ENC = 16            # hparams['encoder_size']
VSZ = 24            # hparams['v_size']
B = 2
S = 8               # seq_len
BS = B * S

# ---- packed-weight slab layout (all row offsets 8-sublane aligned) ---------
SLAB_LANES = 128
R_WIN, R_BIN = 0, 32          # w_in [E,3E], b_in [1,3E]
R_WO, R_BO = 40, 72           # wo   [E,E],  bo   [1,E]
R_WP, R_BP = 80, 112          # wp   [E,ENC],bp   [1,ENC]
R_WA, R_BA = 120, 136         # wa   [ENC,VSZ], ba [1,VSZ]
R_WAV, R_BAV = 144, 152       # wav  [1,VSZ], bav [1,1]
R_MASK, R_POOL = 160, 176     # mask bias [BS,BS], pool [B,BS]
SLAB_ROWS = 184


# ---------------------------------------------------------------------------
# Pallas kernel: embedding + MHA self-attention + proj + additive attention,
# whole batch folded into sublanes, single invocation, no grid, no scratch.
# ---------------------------------------------------------------------------
def review_encoder_kernel(tok_ref, emb_ref, slab_ref, out_ref):
    f32 = jnp.float32

    # --- static slices of the packed weight slab -----------------------------
    w_in = slab_ref[R_WIN:R_WIN + EMBED, 0:3 * EMBED]      # [E, 3E]
    b_in = slab_ref[R_BIN:R_BIN + 1, 0:3 * EMBED]          # [1, 3E]
    bo = slab_ref[R_BO:R_BO + 1, 0:EMBED]                  # [1, E]
    wp = slab_ref[R_WP:R_WP + EMBED, 0:ENC]                # [E, ENC]
    bp = slab_ref[R_BP:R_BP + 1, 0:ENC]                    # [1, ENC]
    wa = slab_ref[R_WA:R_WA + ENC, 0:VSZ]                  # [ENC, VSZ]
    ba = slab_ref[R_BA:R_BA + 1, 0:VSZ]                    # [1, VSZ]
    wav = slab_ref[R_WAV:R_WAV + 1, 0:VSZ]                 # [1, VSZ]
    bav = slab_ref[R_BAV:R_BAV + 1, 0:1]                   # [1, 1]
    maskb = slab_ref[R_MASK:R_MASK + BS, 0:BS]             # [BS, BS] 0 / -1e30
    pool = slab_ref[R_POOL:R_POOL + B, 0:BS]               # [B, BS] 0/1 segments

    # --- embedding lookup fused as a one-hot matmul (VOCAB=100 is tiny) ------
    tok = tok_ref[...]                                               # [BS, 1] i32
    vocab_ids = lax.broadcasted_iota(jnp.int32, (BS, VOCAB), 1)
    onehot = (tok == vocab_ids).astype(f32)                          # [BS, VOCAB]
    x = jnp.dot(onehot, emb_ref[...], preferred_element_type=f32)    # [BS, E]

    # --- fused QKV projection (1/sqrt(head_dim) folded into the Q block) -----
    qkv = jnp.dot(x, w_in, preferred_element_type=f32) + b_in        # [BS, 3E]
    q = qkv[:, 0:EMBED]
    v = qkv[:, 2 * EMBED:3 * EMBED]
    kT = qkv[:, EMBED:2 * EMBED].T                                   # [E, BS], ONE transpose

    # --- multi-head self-attention; output projection folded into head loop --
    acc = None
    for h in range(NHEAD):                       # static unroll over heads
        sl = slice(h * HEAD_DIM, (h + 1) * HEAD_DIM)
        s = jnp.dot(q[:, sl], kT[sl, :], preferred_element_type=f32) + maskb  # [BS, BS]
        s = s - jnp.max(s, axis=-1, keepdims=True)
        p = jnp.exp(s)
        p = p * pl.reciprocal(jnp.sum(p, axis=-1, keepdims=True), approx=False)
        ctx_h = jnp.dot(p, v[:, sl], preferred_element_type=f32)              # [BS, HD]
        wo_h = slab_ref[R_WO + h * HEAD_DIM:R_WO + (h + 1) * HEAD_DIM, 0:EMBED]
        contrib = jnp.dot(ctx_h, wo_h, preferred_element_type=f32)            # [BS, E]
        acc = contrib if acc is None else acc + contrib
    attn_out = acc + bo                                                        # [BS, E]

    # --- proj: Linear(embed_size -> encoder_size) ----------------------------
    hdd = jnp.dot(attn_out, wp, preferred_element_type=f32) + bp               # [BS, ENC]

    # --- additive attention: segmented softmax via the pooling matmul --------
    t = jnp.tanh(jnp.dot(hdd, wa, preferred_element_type=f32) + ba)            # [BS, VSZ]
    w = jnp.sum(t * wav, axis=-1, keepdims=True) + bav                         # [BS, 1]
    ew = jnp.exp(w - jnp.max(w, axis=0, keepdims=True))                        # [BS, 1]
    rhs = jnp.concatenate([ew * hdd, ew], axis=1)                              # [BS, ENC+1]
    pooled = jnp.dot(pool, rhs, preferred_element_type=f32)                    # [B, ENC+1]
    out = pooled[:, 0:ENC] * pl.reciprocal(pooled[:, ENC:ENC + 1], approx=False)
    out_ref[...] = out.astype(out_ref.dtype)


# ---------------------------------------------------------------------------
# Wrapper: single pallas_call, whole arrays in VMEM, no grid.
# ---------------------------------------------------------------------------
@jax.jit
def review_encoder(tokens, packed):
    tok2d = tokens.reshape(BS, 1).astype(jnp.int32)
    return pl.pallas_call(
        review_encoder_kernel,
        out_shape=jax.ShapeDtypeStruct((B, ENC), jnp.float32),
    )(tok2d, packed["embedding"], packed["slab"])


# ---------------------------------------------------------------------------
# Parameter packing (one-time, outside the kernel call path)
# ---------------------------------------------------------------------------
def pack_params(p):
    scale = 1.0 / math.sqrt(HEAD_DIM)
    w_in_t = jnp.concatenate([p["wq_t"] * scale, p["wk_t"], p["wv_t"]], axis=1)  # [E, 3E]
    b_in = jnp.concatenate([p["bq"] * scale, p["bk"], p["bv"]], axis=1)          # [1, 3E]

    seg = jnp.arange(BS, dtype=jnp.int32) // S                                   # [BS]
    maskb = jnp.where(seg[:, None] == seg[None, :], 0.0, -1e30).astype(jnp.float32)
    pool = (seg[None, :] == jnp.arange(B, dtype=jnp.int32)[:, None]).astype(jnp.float32)

    slab = jnp.zeros((SLAB_ROWS, SLAB_LANES), jnp.float32)

    def put(s, row, a):
        return s.at[row:row + a.shape[0], 0:a.shape[1]].set(a)

    slab = put(slab, R_WIN, w_in_t)
    slab = put(slab, R_BIN, b_in)
    slab = put(slab, R_WO, p["wo_t"])
    slab = put(slab, R_BO, p["bo"])
    slab = put(slab, R_WP, p["wp_t"])
    slab = put(slab, R_BP, p["bp"])
    slab = put(slab, R_WA, p["wa_t"])
    slab = put(slab, R_BA, p["ba"])
    slab = put(slab, R_WAV, p["wav_t"].T)     # [1, VSZ]
    slab = put(slab, R_BAV, p["bav"])
    slab = put(slab, R_MASK, maskb)
    slab = put(slab, R_POOL, pool)
    return {"embedding": p["embedding"], "slab": slab}


# ---------------------------------------------------------------------------
# Pure-JAX reference (unfused params) for correctness check
# ---------------------------------------------------------------------------
def review_encoder_ref(tokens, params):
    emb = jnp.take(params["embedding"], tokens, axis=0)              # [B, S, E]
    q = emb @ params["wq_t"] + params["bq"][0]
    k = emb @ params["wk_t"] + params["bk"][0]
    v = emb @ params["wv_t"] + params["bv"][0]

    def split(a):  # [B, S, E] -> [B, H, S, D]
        return a.reshape(B, S, NHEAD, HEAD_DIM).transpose(0, 2, 1, 3)

    qh, kh, vh = split(q), split(k), split(v)
    s = jnp.einsum("bhqd,bhkd->bhqk", qh, kh) / math.sqrt(HEAD_DIM)
    p = jax.nn.softmax(s, axis=-1)
    ctx = jnp.einsum("bhqk,bhkd->bhqd", p, vh)
    ctx = ctx.transpose(0, 2, 1, 3).reshape(B, S, EMBED)
    attn_out = ctx @ params["wo_t"] + params["bo"][0]
    hdd = attn_out @ params["wp_t"] + params["bp"][0]
    t = jnp.tanh(hdd @ params["wa_t"] + params["ba"][0])
    w = (t @ params["wav_t"] + params["bav"][0])[..., 0]             # [B, S]
    w = jax.nn.softmax(w, axis=-1)
    return jnp.einsum("bs,bse->be", w, hdd)                          # [B, ENC]


# ---------------------------------------------------------------------------
def make_params(key):
    keys = jax.random.split(key, 16)
    init = lambda k, shape, scale: (scale * jax.random.normal(k, shape)).astype(jnp.float32)
    return {
        "embedding": init(keys[0], (VOCAB, EMBED), 0.1),
        # MHA in_proj (split into q/k/v), stored pre-transposed: x @ W^T
        "wq_t": init(keys[1], (EMBED, EMBED), 0.05),
        "bq":   init(keys[2], (1, EMBED), 0.01),
        "wk_t": init(keys[3], (EMBED, EMBED), 0.05),
        "bk":   init(keys[4], (1, EMBED), 0.01),
        "wv_t": init(keys[5], (EMBED, EMBED), 0.05),
        "bv":   init(keys[6], (1, EMBED), 0.01),
        "wo_t": init(keys[7], (EMBED, EMBED), 0.05),
        "bo":   init(keys[8], (1, EMBED), 0.01),
        # proj: Linear(embed_size -> encoder_size)
        "wp_t": init(keys[9], (EMBED, ENC), 0.05),
        "bp":   init(keys[10], (1, ENC), 0.01),
        # additive attention: Linear(enc -> v_size), Linear(v_size -> 1)
        "wa_t": init(keys[11], (ENC, VSZ), 0.05),
        "ba":   init(keys[12], (1, VSZ), 0.01),
        "wav_t": init(keys[13], (VSZ, 1), 0.05),
        "bav":  init(keys[14], (1, 1), 0.01),
    }


if __name__ == "__main__":
    key = jax.random.PRNGKey(0)
    pkey, tkey = jax.random.split(key)
    params = make_params(pkey)
    packed = pack_params(params)
    tokens = jax.random.randint(tkey, (B, S), 0, VOCAB, dtype=jnp.int32)

    out = review_encoder(tokens, packed)
    out = jax.block_until_ready(out)
    assert out.shape == (B, ENC), out.shape

    ref = review_encoder_ref(tokens, params)
    assert jnp.allclose(out, ref, rtol=1e-3, atol=1e-4), (
        f"max abs err {jnp.max(jnp.abs(out - ref))}")

    print("KERNEL_OK")
</pallas_src>

<mosaic_0001>
module attributes {stable_mosaic.version = 11 : i64} {
  func.func @review_encoder_kernel(%arg0: memref<16x1xi32, #tpu.memory_space<vmem>>, %arg1: memref<100x32xf32, #tpu.memory_space<vmem>>, %arg2: memref<184x128xf32, #tpu.memory_space<vmem>>, %arg3: memref<2x16xf32, #tpu.memory_space<vmem>>) attributes {dimension_semantics = [], scalar_prefetch = 0 : i64, scratch_operands = 0 : i64, tpu.core_type = #tpu.core_type<tc>} {
    %c0 = arith.constant 0 : index
    %c0_0 = arith.constant 0 : index
    %0 = vector.load %arg2[%c0, %c0_0] : memref<184x128xf32, #tpu.memory_space<vmem>>, vector<32x96xf32>
    %c32 = arith.constant 32 : index
    %c0_1 = arith.constant 0 : index
    %1 = vector.load %arg2[%c32, %c0_1] : memref<184x128xf32, #tpu.memory_space<vmem>>, vector<1x96xf32>
    %c72 = arith.constant 72 : index
    %c0_2 = arith.constant 0 : index
    %2 = vector.load %arg2[%c72, %c0_2] : memref<184x128xf32, #tpu.memory_space<vmem>>, vector<1x32xf32>
    %c80 = arith.constant 80 : index
    %c0_3 = arith.constant 0 : index
    %3 = vector.load %arg2[%c80, %c0_3] : memref<184x128xf32, #tpu.memory_space<vmem>>, vector<32x16xf32>
    %c112 = arith.constant 112 : index
    %c0_4 = arith.constant 0 : index
    %4 = vector.load %arg2[%c112, %c0_4] : memref<184x128xf32, #tpu.memory_space<vmem>>, vector<1x16xf32>
    %c120 = arith.constant 120 : index
    %c0_5 = arith.constant 0 : index
    %5 = vector.load %arg2[%c120, %c0_5] : memref<184x128xf32, #tpu.memory_space<vmem>>, vector<16x24xf32>
    %c136 = arith.constant 136 : index
    %c0_6 = arith.constant 0 : index
    %6 = vector.load %arg2[%c136, %c0_6] : memref<184x128xf32, #tpu.memory_space<vmem>>, vector<1x24xf32>
    %c144 = arith.constant 144 : index
    %c0_7 = arith.constant 0 : index
    %7 = vector.load %arg2[%c144, %c0_7] : memref<184x128xf32, #tpu.memory_space<vmem>>, vector<1x24xf32>
    %c152 = arith.constant 152 : index
    %c0_8 = arith.constant 0 : index
    %8 = vector.load %arg2[%c152, %c0_8] : memref<184x128xf32, #tpu.memory_space<vmem>>, vector<1x1xf32>
    %c160 = arith.constant 160 : index
    %c0_9 = arith.constant 0 : index
    %9 = vector.load %arg2[%c160, %c0_9] : memref<184x128xf32, #tpu.memory_space<vmem>>, vector<16x16xf32>
    %c176 = arith.constant 176 : index
    %c0_10 = arith.constant 0 : index
    %10 = vector.load %arg2[%c176, %c0_10] : memref<184x128xf32, #tpu.memory_space<vmem>>, vector<2x16xf32>
    %c0_11 = arith.constant 0 : index
    %c0_12 = arith.constant 0 : index
    %11 = vector.load %arg0[%c0_11, %c0_12] : memref<16x1xi32, #tpu.memory_space<vmem>>, vector<16x1xi32>
    %12 = tpu.iota {dimensions = array<i32: 1>} : vector<16x100xi32>
    %13 = vector.broadcast %11 : vector<16x1xi32> to vector<16x100xi32>
    %14 = arith.cmpi eq, %13, %12 : vector<16x100xi32>
    %15 = arith.extui %14 : vector<16x100xi1> to vector<16x100xi32>
    %16 = arith.sitofp %15 : vector<16x100xi32> to vector<16x100xf32>
    %c0_13 = arith.constant 0 : index
    %c0_14 = arith.constant 0 : index
    %17 = vector.load %arg1[%c0_13, %c0_14] : memref<100x32xf32, #tpu.memory_space<vmem>>, vector<100x32xf32>
    %cst = arith.constant dense<0.000000e+00> : vector<16x32xf32>
    %18 = tpu.matmul %16, %17, %cst {dimension_numbers = #tpu.dot_dimension_numbers<[1], [0], [0], [1], [0, 0, 1, 1], [], []>} : vector<16x100xf32>, vector<100x32xf32>, vector<16x32xf32> -> vector<16x32xf32>
    %cst_15 = arith.constant dense<0.000000e+00> : vector<16x96xf32>
    %19 = tpu.matmul %18, %0, %cst_15 {dimension_numbers = #tpu.dot_dimension_numbers<[1], [0], [0], [1], [0, 0, 1, 1], [], []>} : vector<16x32xf32>, vector<32x96xf32>, vector<16x96xf32> -> vector<16x96xf32>
    %20 = vector.broadcast %1 : vector<1x96xf32> to vector<16x96xf32>
    %21 = arith.addf %19, %20 : vector<16x96xf32>
    %22 = vector.extract_strided_slice %21 {offsets = [0, 0], sizes = [16, 32], strides = [1, 1]} : vector<16x96xf32> to vector<16x32xf32>
    %23 = vector.extract_strided_slice %21 {offsets = [0, 64], sizes = [16, 32], strides = [1, 1]} : vector<16x96xf32> to vector<16x32xf32>
    %24 = vector.extract_strided_slice %21 {offsets = [0, 32], sizes = [16, 32], strides = [1, 1]} : vector<16x96xf32> to vector<16x32xf32>
    %25 = tpu.transpose %24, [1, 0] : vector<16x32xf32> -> vector<32x16xf32>
    %26 = vector.extract_strided_slice %22 {offsets = [0, 0], sizes = [16, 8], strides = [1, 1]} : vector<16x32xf32> to vector<16x8xf32>
    %27 = vector.extract_strided_slice %25 {offsets = [0, 0], sizes = [8, 16], strides = [1, 1]} : vector<32x16xf32> to vector<8x16xf32>
    %cst_16 = arith.constant dense<0.000000e+00> : vector<16x16xf32>
    %28 = tpu.matmul %26, %27, %cst_16 {dimension_numbers = #tpu.dot_dimension_numbers<[1], [0], [0], [1], [0, 0, 1, 1], [], []>} : vector<16x8xf32>, vector<8x16xf32>, vector<16x16xf32> -> vector<16x16xf32>
    %29 = arith.addf %28, %9 : vector<16x16xf32>
    %cst_17 = arith.constant dense<0xFF800000> : vector<16xf32>
    %30 = vector.multi_reduction <maximumf>, %29, %cst_17 [1] : vector<16x16xf32> to vector<16xf32>
    %31 = vector.shape_cast %30 : vector<16xf32> to vector<16x1xf32>
    %32 = vector.broadcast %31 : vector<16x1xf32> to vector<16x16xf32>
    %33 = arith.subf %29, %32 : vector<16x16xf32>
    %34 = math.exp %33 : vector<16x16xf32>
    %cst_18 = arith.constant dense<0.000000e+00> : vector<16xf32>
    %35 = vector.multi_reduction <add>, %34, %cst_18 [1] : vector<16x16xf32> to vector<16xf32>
    %36 = vector.shape_cast %35 : vector<16xf32> to vector<16x1xf32>
    %37 = tpu.reciprocal %36 : vector<16x1xf32> -> vector<16x1xf32>
    %38 = vector.broadcast %37 : vector<16x1xf32> to vector<16x16xf32>
    %39 = arith.mulf %34, %38 : vector<16x16xf32>
    %40 = vector.extract_strided_slice %23 {offsets = [0, 0], sizes = [16, 8], strides = [1, 1]} : vector<16x32xf32> to vector<16x8xf32>
    %cst_19 = arith.constant dense<0.000000e+00> : vector<16x8xf32>
    %41 = tpu.matmul %39, %40, %cst_19 {dimension_numbers = #tpu.dot_dimension_numbers<[1], [0], [0], [1], [0, 0, 1, 1], [], []>} : vector<16x16xf32>, vector<16x8xf32>, vector<16x8xf32> -> vector<16x8xf32>
    %c40 = arith.constant 40 : index
    %c0_20 = arith.constant 0 : index
    %42 = vector.load %arg2[%c40, %c0_20] : memref<184x128xf32, #tpu.memory_space<vmem>>, vector<8x32xf32>
    %cst_21 = arith.constant dense<0.000000e+00> : vector<16x32xf32>
    %43 = tpu.matmul %41, %42, %cst_21 {dimension_numbers = #tpu.dot_dimension_numbers<[1], [0], [0], [1], [0, 0, 1, 1], [], []>} : vector<16x8xf32>, vector<8x32xf32>, vector<16x32xf32> -> vector<16x32xf32>
    %44 = vector.extract_strided_slice %22 {offsets = [0, 8], sizes = [16, 8], strides = [1, 1]} : vector<16x32xf32> to vector<16x8xf32>
    %45 = vector.extract_strided_slice %25 {offsets = [8, 0], sizes = [8, 16], strides = [1, 1]} : vector<32x16xf32> to vector<8x16xf32>
    %cst_22 = arith.constant dense<0.000000e+00> : vector<16x16xf32>
    %46 = tpu.matmul %44, %45, %cst_22 {dimension_numbers = #tpu.dot_dimension_numbers<[1], [0], [0], [1], [0, 0, 1, 1], [], []>} : vector<16x8xf32>, vector<8x16xf32>, vector<16x16xf32> -> vector<16x16xf32>
    %47 = arith.addf %46, %9 : vector<16x16xf32>
    %cst_23 = arith.constant dense<0xFF800000> : vector<16xf32>
    %48 = vector.multi_reduction <maximumf>, %47, %cst_23 [1] : vector<16x16xf32> to vector<16xf32>
    %49 = vector.shape_cast %48 : vector<16xf32> to vector<16x1xf32>
    %50 = vector.broadcast %49 : vector<16x1xf32> to vector<16x16xf32>
    %51 = arith.subf %47, %50 : vector<16x16xf32>
    %52 = math.exp %51 : vector<16x16xf32>
    %cst_24 = arith.constant dense<0.000000e+00> : vector<16xf32>
    %53 = vector.multi_reduction <add>, %52, %cst_24 [1] : vector<16x16xf32> to vector<16xf32>
    %54 = vector.shape_cast %53 : vector<16xf32> to vector<16x1xf32>
    %55 = tpu.reciprocal %54 : vector<16x1xf32> -> vector<16x1xf32>
    %56 = vector.broadcast %55 : vector<16x1xf32> to vector<16x16xf32>
    %57 = arith.mulf %52, %56 : vector<16x16xf32>
    %58 = vector.extract_strided_slice %23 {offsets = [0, 8], sizes = [16, 8], strides = [1, 1]} : vector<16x32xf32> to vector<16x8xf32>
    %cst_25 = arith.constant dense<0.000000e+00> : vector<16x8xf32>
    %59 = tpu.matmul %57, %58, %cst_25 {dimension_numbers = #tpu.dot_dimension_numbers<[1], [0], [0], [1], [0, 0, 1, 1], [], []>} : vector<16x16xf32>, vector<16x8xf32>, vector<16x8xf32> -> vector<16x8xf32>
    %c48 = arith.constant 48 : index
    %c0_26 = arith.constant 0 : index
    %60 = vector.load %arg2[%c48, %c0_26] : memref<184x128xf32, #tpu.memory_space<vmem>>, vector<8x32xf32>
    %cst_27 = arith.constant dense<0.000000e+00> : vector<16x32xf32>
    %61 = tpu.matmul %59, %60, %cst_27 {dimension_numbers = #tpu.dot_dimension_numbers<[1], [0], [0], [1], [0, 0, 1, 1], [], []>} : vector<16x8xf32>, vector<8x32xf32>, vector<16x32xf32> -> vector<16x32xf32>
    %62 = arith.addf %43, %61 : vector<16x32xf32>
    %63 = vector.extract_strided_slice %22 {offsets = [0, 16], sizes = [16, 8], strides = [1, 1]} : vector<16x32xf32> to vector<16x8xf32>
    %64 = vector.extract_strided_slice %25 {offsets = [16, 0], sizes = [8, 16], strides = [1, 1]} : vector<32x16xf32> to vector<8x16xf32>
    %cst_28 = arith.constant dense<0.000000e+00> : vector<16x16xf32>
    %65 = tpu.matmul %63, %64, %cst_28 {dimension_numbers = #tpu.dot_dimension_numbers<[1], [0], [0], [1], [0, 0, 1, 1], [], []>} : vector<16x8xf32>, vector<8x16xf32>, vector<16x16xf32> -> vector<16x16xf32>
    %66 = arith.addf %65, %9 : vector<16x16xf32>
    %cst_29 = arith.constant dense<0xFF800000> : vector<16xf32>
    %67 = vector.multi_reduction <maximumf>, %66, %cst_29 [1] : vector<16x16xf32> to vector<16xf32>
    %68 = vector.shape_cast %67 : vector<16xf32> to vector<16x1xf32>
    %69 = vector.broadcast %68 : vector<16x1xf32> to vector<16x16xf32>
    %70 = arith.subf %66, %69 : vector<16x16xf32>
    %71 = math.exp %70 : vector<16x16xf32>
    %cst_30 = arith.constant dense<0.000000e+00> : vector<16xf32>
    %72 = vector.multi_reduction <add>, %71, %cst_30 [1] : vector<16x16xf32> to vector<16xf32>
    %73 = vector.shape_cast %72 : vector<16xf32> to vector<16x1xf32>
    %74 = tpu.reciprocal %73 : vector<16x1xf32> -> vector<16x1xf32>
    %75 = vector.broadcast %74 : vector<16x1xf32> to vector<16x16xf32>
    %76 = arith.mulf %71, %75 : vector<16x16xf32>
    %77 = vector.extract_strided_slice %23 {offsets = [0, 16], sizes = [16, 8], strides = [1, 1]} : vector<16x32xf32> to vector<16x8xf32>
    %cst_31 = arith.constant dense<0.000000e+00> : vector<16x8xf32>
    %78 = tpu.matmul %76, %77, %cst_31 {dimension_numbers = #tpu.dot_dimension_numbers<[1], [0], [0], [1], [0, 0, 1, 1], [], []>} : vector<16x16xf32>, vector<16x8xf32>, vector<16x8xf32> -> vector<16x8xf32>
    %c56 = arith.constant 56 : index
    %c0_32 = arith.constant 0 : index
    %79 = vector.load %arg2[%c56, %c0_32] : memref<184x128xf32, #tpu.memory_space<vmem>>, vector<8x32xf32>
    %cst_33 = arith.constant dense<0.000000e+00> : vector<16x32xf32>
    %80 = tpu.matmul %78, %79, %cst_33 {dimension_numbers = #tpu.dot_dimension_numbers<[1], [0], [0], [1], [0, 0, 1, 1], [], []>} : vector<16x8xf32>, vector<8x32xf32>, vector<16x32xf32> -> vector<16x32xf32>
    %81 = arith.addf %62, %80 : vector<16x32xf32>
    %82 = vector.extract_strided_slice %22 {offsets = [0, 24], sizes = [16, 8], strides = [1, 1]} : vector<16x32xf32> to vector<16x8xf32>
    %83 = vector.extract_strided_slice %25 {offsets = [24, 0], sizes = [8, 16], strides = [1, 1]} : vector<32x16xf32> to vector<8x16xf32>
    %cst_34 = arith.constant dense<0.000000e+00> : vector<16x16xf32>
    %84 = tpu.matmul %82, %83, %cst_34 {dimension_numbers = #tpu.dot_dimension_numbers<[1], [0], [0], [1], [0, 0, 1, 1], [], []>} : vector<16x8xf32>, vector<8x16xf32>, vector<16x16xf32> -> vector<16x16xf32>
    %85 = arith.addf %84, %9 : vector<16x16xf32>
    %cst_35 = arith.constant dense<0xFF800000> : vector<16xf32>
    %86 = vector.multi_reduction <maximumf>, %85, %cst_35 [1] : vector<16x16xf32> to vector<16xf32>
    %87 = vector.shape_cast %86 : vector<16xf32> to vector<16x1xf32>
    %88 = vector.broadcast %87 : vector<16x1xf32> to vector<16x16xf32>
    %89 = arith.subf %85, %88 : vector<16x16xf32>
    %90 = math.exp %89 : vector<16x16xf32>
    %cst_36 = arith.constant dense<0.000000e+00> : vector<16xf32>
    %91 = vector.multi_reduction <add>, %90, %cst_36 [1] : vector<16x16xf32> to vector<16xf32>
    %92 = vector.shape_cast %91 : vector<16xf32> to vector<16x1xf32>
    %93 = tpu.reciprocal %92 : vector<16x1xf32> -> vector<16x1xf32>
    %94 = vector.broadcast %93 : vector<16x1xf32> to vector<16x16xf32>
    %95 = arith.mulf %90, %94 : vector<16x16xf32>
    %96 = vector.extract_strided_slice %23 {offsets = [0, 24], sizes = [16, 8], strides = [1, 1]} : vector<16x32xf32> to vector<16x8xf32>
    %cst_37 = arith.constant dense<0.000000e+00> : vector<16x8xf32>
    %97 = tpu.matmul %95, %96, %cst_37 {dimension_numbers = #tpu.dot_dimension_numbers<[1], [0], [0], [1], [0, 0, 1, 1], [], []>} : vector<16x16xf32>, vector<16x8xf32>, vector<16x8xf32> -> vector<16x8xf32>
    %c64 = arith.constant 64 : index
    %c0_38 = arith.constant 0 : index
    %98 = vector.load %arg2[%c64, %c0_38] : memref<184x128xf32, #tpu.memory_space<vmem>>, vector<8x32xf32>
    %cst_39 = arith.constant dense<0.000000e+00> : vector<16x32xf32>
    %99 = tpu.matmul %97, %98, %cst_39 {dimension_numbers = #tpu.dot_dimension_numbers<[1], [0], [0], [1], [0, 0, 1, 1], [], []>} : vector<16x8xf32>, vector<8x32xf32>, vector<16x32xf32> -> vector<16x32xf32>
    %100 = arith.addf %81, %99 : vector<16x32xf32>
    %101 = vector.broadcast %2 : vector<1x32xf32> to vector<16x32xf32>
    %102 = arith.addf %100, %101 : vector<16x32xf32>
    %cst_40 = arith.constant dense<0.000000e+00> : vector<16x16xf32>
    %103 = tpu.matmul %102, %3, %cst_40 {dimension_numbers = #tpu.dot_dimension_numbers<[1], [0], [0], [1], [0, 0, 1, 1], [], []>} : vector<16x32xf32>, vector<32x16xf32>, vector<16x16xf32> -> vector<16x16xf32>
    %104 = vector.broadcast %4 : vector<1x16xf32> to vector<16x16xf32>
    %105 = arith.addf %103, %104 : vector<16x16xf32>
    %cst_41 = arith.constant dense<0.000000e+00> : vector<16x24xf32>
    %106 = tpu.matmul %105, %5, %cst_41 {dimension_numbers = #tpu.dot_dimension_numbers<[1], [0], [0], [1], [0, 0, 1, 1], [], []>} : vector<16x16xf32>, vector<16x24xf32>, vector<16x24xf32> -> vector<16x24xf32>
    %107 = vector.broadcast %6 : vector<1x24xf32> to vector<16x24xf32>
    %108 = arith.addf %106, %107 : vector<16x24xf32>
    %109 = math.tanh %108 : vector<16x24xf32>
    %110 = vector.broadcast %7 : vector<1x24xf32> to vector<16x24xf32>
    %111 = arith.mulf %109, %110 : vector<16x24xf32>
    %cst_42 = arith.constant dense<0.000000e+00> : vector<16xf32>
    %112 = vector.multi_reduction <add>, %111, %cst_42 [1] : vector<16x24xf32> to vector<16xf32>
    %113 = vector.shape_cast %112 : vector<16xf32> to vector<16x1xf32>
    %114 = vector.broadcast %8 : vector<1x1xf32> to vector<16x1xf32>
    %115 = arith.addf %113, %114 : vector<16x1xf32>
    %cst_43 = arith.constant dense<0xFF800000> : vector<1xf32>
    %116 = vector.multi_reduction <maximumf>, %115, %cst_43 [0] : vector<16x1xf32> to vector<1xf32>
    %117 = vector.shape_cast %116 : vector<1xf32> to vector<1x1xf32>
    %118 = vector.broadcast %117 : vector<1x1xf32> to vector<16x1xf32>
    %119 = arith.subf %115, %118 : vector<16x1xf32>
    %120 = math.exp %119 : vector<16x1xf32>
    %121 = vector.broadcast %120 : vector<16x1xf32> to vector<16x16xf32>
    %122 = arith.mulf %121, %105 : vector<16x16xf32>
    %123 = tpu.concatenate %122, %120 in 1 : vector<16x16xf32>, vector<16x1xf32> -> vector<16x17xf32>
    %cst_44 = arith.constant dense<0.000000e+00> : vector<2x17xf32>
    %124 = tpu.matmul %10, %123, %cst_44 {dimension_numbers = #tpu.dot_dimension_numbers<[1], [0], [0], [1], [0, 0, 1, 1], [], []>} : vector<2x16xf32>, vector<16x17xf32>, vector<2x17xf32> -> vector<2x17xf32>
    %125 = vector.extract_strided_slice %124 {offsets = [0, 0], sizes = [2, 16], strides = [1, 1]} : vector<2x17xf32> to vector<2x16xf32>
    %126 = vector.extract_strided_slice %124 {offsets = [0, 16], sizes = [2, 1], strides = [1, 1]} : vector<2x17xf32> to vector<2x1xf32>
    %127 = tpu.reciprocal %126 : vector<2x1xf32> -> vector<2x1xf32>
    %128 = vector.broadcast %127 : vector<2x1xf32> to vector<2x16xf32>
    %129 = arith.mulf %125, %128 : vector<2x16xf32>
    %c0_45 = arith.constant 0 : index
    %c0_46 = arith.constant 0 : index
    %130 = vector.load %arg3[%c0_45, %c0_46] : memref<2x16xf32, #tpu.memory_space<vmem>>, vector<2x16xf32>
    tpu.vector_store %arg3[%c0_45, %c0_46], %129 {strides = array<i32>} : memref<2x16xf32, #tpu.memory_space<vmem>>, vector<2x16xf32>,
    return
  }
}

</mosaic_0001>

<bundles_post_ra>
// kernel: review_encoder.1
= control target key start
LH: loop header
LB: loop body
LE: loop exit
PB: predicated region body
PF: predicated region fallthrough
CT: control target
= control target key end

     0   :  { %8 = vsyncpa [#allocation3], 0  ;;  %s2457_s0 = inlined_call_operand.vmem [shape: s32[16,1], index: 0, kind: input, shape index: {}]   ;;  %s2458_s1 = inlined_call_operand.vmem [shape: f32[100,32], index: 1, kind: input, shape index: {}]   ;;  %s2459_s2 = inlined_call_operand.hbm [shape: f32[184,128], index: 2, kind: input, shape index: {}]   ;;  %s2460_s3 = inlined_call_operand.hbm [shape: f32[2,16], index: 3, kind: output, shape index: {}]  }
   0x1   :  { %9 = vsyncpa [#allocation4], 0  ;;  %s2231_s12 = smov [#allocation2]   ;;  %s2183_s16 = scalar_lea.hbm %s2459_s2, 2944 }
   0x2   :  { %s19_s13 = sshll.u32 %s2231_s12, 4  ;;  %p2184_p0 = scmp.ne.s32.totalorder %s2459_s2, %s2183_s16  ;;  %s20_s13 = int_to_ptr.vmem [resolvable:$true] %s19_s13 }
   0x3   :  { %p2187_p1 = scmp.lt.u32.totalorder %s2183_s16, %s2459_s2 }
   0x5   :  { %p2189_p2 = pnand %p2187_p1, %p2184_p0 }
   0x7   :  { %2192 = shalt.err (!%p2189_p2)
}
   0x8   :  { %s2193_s21 = scalar_lea.vmem %s20_s13, 2944  ;;  %p2198_p4 = scmp.lt.s32.totalorder %s20_s13, %s20_s13 }
   0x9   :  { %p2194_p3 = scmp.ne.s32.totalorder %s20_s13, %s2193_s21  ;;  %p2199_p5 = scmp.lt.s32.totalorder %s2193_s21, %s2193_s21 }
   0xb   :  { %p2200_p6 = por %p2199_p5, %p2198_p4 }
   0xd   :  { %p2201_p7 = pnand %p2200_p6, %p2194_p3 }
   0xf   :  { %2204 = shalt.err (!%p2201_p7)
}
  0x10   :  { %s2232_s22 = smov 128   ;;  %s2233_s23 = smov 8  }
  0x11   :  { %25 = dma.hbm_to_vmem [thread:$0]  %s2459_s2, 2944, %s20_s13, [#allocation3], %s2232_s22, %s2232_s22, %s2233_s23  }
  0x12   :  { %2227 = dma.done.wait [#allocation3], 2944  }
  0x13   :  { %2228 = vsyncadd [#allocation3], 4294964352  ;;  %v2234_v0 = vmov 0   ;;  %v48_v1 = vld [vmem:[%s2457_s0] sm:$0xff]  ;;  %v65_v3 = vld [vmem:[%s2458_s1 + $0x8] sm:$0xff]  ;;  %vm84_vm0 = vcmask 1043456   ;;  %v50_v28 = vlaneseq }
  0x14   :  { %2094 = vset.pattern.permute.xlu0 %v2234_v0  ;;  %v64_v2 = vld [vmem:[%s2458_s1] sm:$0xff]  ;;  %v66_v4 = vld [vmem:[%s2458_s1 + $0x10] sm:$0xff]  ;;  %v67_v5 = vld [vmem:[%s2458_s1 + $0x18] sm:$0xff]  ;;  %vm77_vm1 = vcmask 818176   ;;  %v2235_v31 = vmov 0.0   ;;  %vm167_vm4 = vcmask 261120  }
  0x15   :  { %53 = vperm.xlu0 %2094, %v48_v1   ;;  %v49_v6 = vld [vmem:[%s2457_s0 + $0x8] sm:$0xff]  ;;  %v1980_v7 = vpack.c.bf16 %v65_v3, %v64_v2  ;;  %v1984_v8 = vpack.c.bf16 %v67_v5, %v66_v4  ;;  %v68_v9 = vld [vmem:[%s2458_s1 + $0x20] sm:$0xff]  ;;  %v70_v12 = vld [vmem:[%s2458_s1 + $0x30] sm:$0xff]  ;;  %v51_v29 = vand.u32 127, %v50_v28  ;;  %vm255_vm5 = vcmask 64512   ;;  %s2237_s27 = smov 88  }
  0x16   :  { %v69_v10 = vld [vmem:[%s2458_s1 + $0x28] sm:$0xff]  ;;  %v71_v13 = vld [vmem:[%s2458_s1 + $0x38] sm:$0xff]  ;;  %v29_v14 = vld [vmem:[#allocation2] sm:$0xff]  ;;  %vm339_vm7 = vcmask 130048   ;;  %s2238_s28 = smov 120   ;;  %s2239_s29 = smov 64  }
  0x17   :  { %1981 = vmatprep.subr.bf16.mxu0 %v1980_v7  ;;  %v1988_v11 = vpack.c.bf16 %v69_v10, %v68_v9  ;;  %v30_v15 = vld [vmem:[#allocation2 + $0x8] sm:$0xff]  ;;  %v31_v16 = vld [vmem:[#allocation2 + $0x10] sm:$0xff]  ;;  %v32_v18 = vld [vmem:[#allocation2 + $0x18] sm:$0xff]  ;;  %v1992_v20 = vpack.c.bf16 %v71_v13, %v70_v12  ;;  %s2240_s30 = smov 80   ;;  %s2241_s4 = smov 112   ;;  %vm1565_vm8 = vcmask 195584  }
  0x18   :  { %1983 = vmatpush3.bf16.msra.mxu0 %v1980_v7  ;;  %v2004_v17 = vpack.c.bf16 %v30_v15, %v29_v14  ;;  %v2008_v19 = vpack.c.bf16 %v32_v18, %v31_v16  ;;  %v72_v21 = vld [vmem:[%s2458_s1 + $0x40] sm:$0xff]  ;;  %v73_v22 = vld [vmem:[%s2458_s1 + $0x48] sm:$0xff]  ;;  %v74_v24 = vld [vmem:[%s2458_s1 + $0x50] sm:$0xff]  ;;  %s2242_s5 = smov 56   ;;  %s2243_s6 = smov 72   ;;  %vm1578_vm9 = vcmask 7168  }
  0x19   :  { %56 = vperm.xlu0 %2094, %v49_v6   ;;  %1985 = vmatprep.subr.bf16.mxu0 %v1984_v8  ;;  %v1996_v23 = vpack.c.bf16 %v73_v22, %v72_v21  ;;  %v75_v25 = vld [vmem:[%s2458_s1 + $0x58] sm:$0xff]  ;;  %v76_v27 = vld [vmem:[%s2458_s1 + $0x60] sm:$0xf]  ;;  %s2236_s1 = smov 96   ;;  %vm2346_vm6 = vmpackc.low %vm255_vm5, %vm255_vm5  ;;  %s2244_s2 = smov 104   ;;  %vm2249_vm10 = vmmov 0  }
  0x1a   :  { %2005 = vmatprep.subr.bf16.mxu1 %v2004_v17  ;;  %v2000_v26 = vpack.c.bf16 %v75_v25, %v74_v24  ;;  %v1716_v37 = vld [vmem:[#allocation2 + $0x20] ss:$0 sm:$0xff]  ;;  %v2356_v48 = vld [vmem:[#allocation2 + $0xa8] sm:$0xff]  ;;  %s2245_s7 = smov 48   ;;  %s2246_s8 = smov 40   ;;  %vm1694_vm11 = vcmask 123904  }
  0x1b   :  { %2007 = vmatpush3.bf16.msra.mxu1 %v2004_v17  ;;  %v2358_v49 = vld [vmem:[#allocation2 + $0xa0] sm:$0xff]  ;;  %s2247_s9 = smov 16   ;;  %s2251_s10 = smov [#allocation5]  }
  0x1c   :  { %1987 = vmatpush3.bf16.msra.mxu0 %v1984_v8  ;;  %2009 = vmatprep.subr.bf16.mxu1 %v2008_v19  ;;  %s1702_s11 = sshll.u32 %s2251_s10, 4  ;;  %s1703_s11 = int_to_ptr.vmem [resolvable:$true] %s1702_s11 }
  0x1d   :  { %1989 = vmatprep.subr.bf16.mxu0 %v1988_v11  ;;  %s2205_s12 = scalar_lea.vmem %s1703_s11, 32  ;;  %p2210_p9 = scmp.lt.s32.totalorder %s1703_s11, %s1703_s11 }
  0x1e   :  { %p2206_p8 = scmp.ne.s32.totalorder %s1703_s11, %s2205_s12  ;;  %p2211_p10 = scmp.lt.s32.totalorder %s2205_s12, %s2205_s12 }
  0x1f   :  { %2011 = vmatpush3.bf16.msra.mxu1 %v2008_v19 }
  0x20   :  { %1991 = vmatpush3.bf16.msra.mxu0 %v1988_v11  ;;  %p2212_p11 = por %p2211_p10, %p2210_p9 }
  0x21   :  { %1993 = vmatprep.subr.bf16.mxu0 %v1992_v20 }
  0x22   :  { %p2213_p12 = pnand %p2212_p11, %p2206_p8 }
  0x24   :  { %1995 = vmatpush3.bf16.msra.mxu0 %v1992_v20 }
  0x25   :  { %1997 = vmatprep.subr.bf16.mxu0 %v1996_v23 }
  0x28   :  { %1999 = vmatpush3.bf16.msra.mxu0 %v1996_v23 }
  0x29   :  { %2001 = vmatprep.subr.bf16.mxu0 %v2000_v26 }
  0x2c   :  { %2003 = vmatpush3.bf16.msra.mxu0 %v2000_v26 }
  0x2d   :  { %1863 = vmatprep.subr.msk.mxu0 %vm84_vm0, %v76_v27 }
  0x30   :  { %1864 = vmatpush3.msk.msra.mxu0 %vm84_vm0, %v76_v27 }
  0x94   :  { %v54_v30 = vpop.permute.xlu0 %53 }
  0x95   :  { %vm58_vm2 = vcmp.eq.s32.totalorder %v54_v30, %v51_v29 }
  0x96   :  { %v1711_v32 = vsel %vm58_vm2, 1.0, %v2235_v31 }
  0x97   :  { %1865 = vmatprep.mubr.msk.f32.mxu0 %vm77_vm1, %v1711_v32 }
  0x98   :  { %v57_v33 = vpop.permute.xlu0 %56 }
  0x99   :  { %vm59_vm3 = vcmp.eq.s32.totalorder %v57_v33, %v51_v29 }
  0x9a   :  { %v1712_v34 = vsel %vm59_vm3, 1.0, %v2235_v31 }
  0x9b   :  { %1866 = vmatmul.mubr.msk.f32.vlgmr.msra.gmra.mrb[0].mxu0 %vm77_vm1, %v1712_v34 }
 0x16e   :  { %v1867_v35 = vpop.f32.mrb[0].mxu0 }
 0x16f   :  { %v154_v36 = vpop.f32.mrb[1].mxu0 }
 0x170   :  { %1876 = vmatprep.mubr.msk.f32.mxu1 %vm167_vm4, %v154_v36 }
 0x171   :  { %1877 = vmatmul.mubr.msk.f32.vlgmr.msra.gmra.mrb[0].mxu1 %vm167_vm4, %v1867_v35 }
 0x244   :  { %v1878_v38 = vpop.f32.mrb[0].mxu1 }
 0x245   :  { %v2333_v39 = vadd.f32 %v1878_v38, %v1716_v37  ;;  %v240_v40 = vpop.f32.mrb[1].mxu1 }
 0x246   :  { %v2335_v41 = vadd.f32 %v1716_v37, %v240_v40 }
 0x248   :  { %1883 = vmatprep.mubr.msk.f32.mxu1 %vm255_vm5, %v2335_v41  ;;  %v2341_v42 = vpack.i.bf16 %v2333_v39, %v2335_v41 }
 0x24a   :  { %2096 = vrot.lane.b32.xlu1 %v2341_v42, %s2236_s1 }
 0x2bc   :  { %v2097_v43 = vpop.permute.xlu1 %2096 }
 0x2bd   :  { %v2099_v44 = vunpack.i.h.bf16 %v2097_v43  ;;  %v2098_v45 = vunpack.i.l.bf16 %v2097_v43 }
 0x2bf   :  { %v2012_v47 = vpack.c.bf16 %v2099_v44, %v2098_v45 }
 0x2c1   :  { %2014 = vmatprep.subr.msk.bf16.mxu1 %vm2346_vm6, %v2012_v47 }
 0x2c2   :  { %2017 = vmatpush3.bf16.xpose.msk.msra.mxu1 %vm2346_vm6, %v2012_v47 }
 0x2c9   :  { %1884 = vmatmul.mubr.msk.f32.vlgmr.msra.gmra.mrb[2].mxu1 %vm255_vm5, %v2333_v39 }
 0x39c   :  { %v1885_v50 = vpop.f32.mrb[2].mxu1 }
 0x39d   :  { %v336_v51 = vadd.f32 %v1885_v50, %v2356_v48  ;;  %v330_v52 = vpop.f32.mrb[3].mxu1 }
 0x39e   :  { %v331_v53 = vadd.f32 %v330_v52, %v2358_v49 }
 0x39f   :  { %v343_v54 = vsel %vm339_vm7, %v336_v51, -inf }
 0x3a0   :  { %344 = vmax.xlane.f32.xlu0 %v343_v54  ;;  %v340_v55 = vsel %vm339_vm7, %v331_v53, -inf }
 0x3a1   :  { %341 = vmax.xlane.f32.xlu1 %v340_v55 }
 0x42d   :  { %v345_v56 = vpop.xlane.xlu0 %344 }
 0x42e   :  { %v347_v57 = vsub.f32 %v336_v51, %v345_v56  ;;  %v342_v58 = vpop.xlane.xlu1 %341 }
 0x42f   :  { %v346_v59 = vsub.f32 %v331_v53, %v342_v58 }
 0x430   :  { %v350_v60 = vmul.f32 1.442695, %v347_v57 }
 0x431   :  { %v348_v61 = vmul.f32 1.442695, %v346_v59 }
 0x432   :  { %2141 = vpow2.f32 %v350_v60 }
 0x433   :  { %2143 = vpow2.f32 %v348_v61 }
 0x43c   :  { %v2142_v62 = vpop.eup %2141 }
 0x43d   :  { %v2144_v63 = vpop.eup %2143  ;;  %v355_v0 = vsel %vm339_vm7, %v2142_v62, 0.0 }
 0x43e   :  { %356 = vadd.xlane.f32.xlu1 %v355_v0  ;;  %v352_v1 = vsel %vm339_vm7, %v2144_v63, 0.0  ;;  %v449_v0 = vld [vmem:[#allocation2 + $0x28] sm:$0xff] }
 0x43f   :  { %353 = vadd.xlane.f32.xlu0 %v352_v1 }
 0x44f   :  { %2106 = vrot.lane.b32.xlu1 %v2341_v42, %s2237_s27 }
 0x453   :  { %450 = vrot.lane.b32.xlu1 %v2335_v41, %s2238_s28 }
 0x455   :  { %2101 = vrot.lane.b32.xlu0 %v2341_v42, %s2239_s29 }
 0x459   :  { %452 = vrot.lane.b32.xlu0 %v2333_v39, %s2238_s28 }
 0x4cb   :  { %v357_v2 = vpop.xlane.xlu1 %356 }
 0x4cc   :  { %2145 = vrcp.f32 %v357_v2  ;;  %v354_v3 = vpop.xlane.xlu0 %353 }
 0x4cd   :  { %2147 = vrcp.f32 %v354_v3 }
 0x4cf   :  { %v2107_v4 = vpop.permute.xlu1 %2106 }
 0x4d0   :  { %v2102_v5 = vpop.permute.xlu0 %2101  ;;  %v2109_v6 = vunpack.i.h.bf16 %v2107_v4  ;;  %v2108_v7 = vunpack.i.l.bf16 %v2107_v4 }
 0x4d1   :  { %v2104_v8 = vunpack.i.h.bf16 %v2102_v5  ;;  %v2103_v9 = vunpack.i.l.bf16 %v2102_v5 }
 0x4d2   :  { %v2022_v11 = vpack.c.bf16 %v2109_v6, %v2108_v7 }
 0x4d3   :  { %v2018_v10 = vpack.c.bf16 %v2104_v8, %v2103_v9  ;;  %v451_v16 = vpop.permute.xlu1 %450 }
 0x4d4   :  { %v453_v17 = vpop.permute.xlu0 %452 }
 0x4d5   :  { %2019 = vmatprep.subr.bf16.mxu1 %v2018_v10 }
 0x4d6   :  { %v2146_v12 = vpop.eup %2145  ;;  %2021 = vmatpush3.bf16.msra.mxu1 %v2018_v10 }
 0x4d7   :  { %v2148_v13 = vpop.eup %2147  ;;  %2024 = vmatprep.subr.msk.bf16.mxu1 %vm2346_vm6, %v2022_v11  ;;  %v361_v15 = vmul.f32 %v2146_v12, %v2142_v62 }
 0x4d8   :  { %v360_v14 = vmul.f32 %v2148_v13, %v2144_v63  ;;  %v650_v63 = vld [vmem:[#allocation2 + $0x30] sm:$0xff] }
 0x4da   :  { %1890 = vmatprep.mubr.msk.f32.mxu1 %vm339_vm7, %v360_v14 }
 0x4db   :  { %1891 = vmatmul.mubr.msk.f32.vlgmr.msra.gmra.mrb[4].mxu1 %vm339_vm7, %v361_v15 }
 0x4dc   :  { %1897 = vmatprep.mubr.msk.f32.mxu1 %vm255_vm5, %v451_v16 }
 0x4df   :  { %2027 = vmatpush3.bf16.xpose.msk.msra.mxu1 %vm2346_vm6, %v2022_v11 }
 0x4e0   :  { %1907 = vmatprep.subr.mxu1 %v650_v63 }
 0x4e6   :  { %1898 = vmatmul.mubr.msk.f32.vlgmr.msra.gmra.mrb[6].mxu1 %vm255_vm5, %v453_v17 }
 0x4e7   :  { %1908 = vmatpush3.msra.mxu1 %v650_v63 }
 0x4e8   :  { %1912 = vmatprep.subr.mxu1 %v449_v0 }
 0x5ae   :  { %v2378_v18 = vpop.f32.mrb[4].mxu1 }
 0x5af   :  { %v2380_v19 = vpop.f32.mrb[5].mxu1 }
 0x5b9   :  { %v1899_v20 = vpop.f32.mrb[6].mxu1 }
 0x5ba   :  { %v538_v21 = vadd.f32 %v1899_v20, %v2356_v48  ;;  %v532_v22 = vpop.f32.mrb[7].mxu1 }
 0x5bb   :  { %v533_v23 = vadd.f32 %v532_v22, %v2358_v49 }
 0x5bc   :  { %v544_v24 = vsel %vm339_vm7, %v538_v21, -inf }
 0x5bd   :  { %545 = vmax.xlane.f32.xlu0 %v544_v24  ;;  %v541_v25 = vsel %vm339_vm7, %v533_v23, -inf }
 0x5be   :  { %542 = vmax.xlane.f32.xlu1 %v541_v25 }
 0x64a   :  { %v546_v26 = vpop.xlane.xlu0 %545 }
 0x64b   :  { %v548_v27 = vsub.f32 %v538_v21, %v546_v26  ;;  %v543_v28 = vpop.xlane.xlu1 %542 }
 0x64c   :  { %v547_v29 = vsub.f32 %v533_v23, %v543_v28 }
 0x64d   :  { %v551_v30 = vmul.f32 1.442695, %v548_v27  ;;  %v1013_v27 = vld [vmem:[#allocation2 + $0x38] sm:$0xff] }
 0x64e   :  { %v549_v32 = vmul.f32 1.442695, %v547_v29 }
 0x64f   :  { %2149 = vpow2.f32 %v551_v30 }
 0x650   :  { %2151 = vpow2.f32 %v549_v32 }
 0x659   :  { %v2150_v33 = vpop.eup %2149 }
 0x65a   :  { %v2152_v34 = vpop.eup %2151  ;;  %v556_v35 = vsel %vm339_vm7, %v2150_v33, 0.0 }
 0x65b   :  { %557 = vadd.xlane.f32.xlu1 %v556_v35  ;;  %v553_v36 = vsel %vm339_vm7, %v2152_v34, 0.0 }
 0x65c   :  { %554 = vadd.xlane.f32.xlu0 %v553_v36 }
 0x66c   :  { %2116 = vrot.lane.b32.xlu1 %v2341_v42, %s2240_s30 }
 0x670   :  { %813 = vrot.lane.b32.xlu1 %v2335_v41, %s2241_s4 }
 0x672   :  { %2111 = vrot.lane.b32.xlu0 %v2341_v42, %s2242_s5 }
 0x674   :  { %2121 = vrot.lane.b32.xlu1 %v2341_v42, %s2243_s6 }
 0x676   :  { %815 = vrot.lane.b32.xlu0 %v2333_v39, %s2241_s4 }
 0x678   :  { %1099 = vrot.lane.b32.xlu1 %v2333_v39, %s2244_s2 }
 0x67a   :  { %1097 = vrot.lane.b32.xlu0 %v2335_v41, %s2244_s2 }
 0x6e8   :  { %v558_v37 = vpop.xlane.xlu1 %557 }
 0x6e9   :  { %2153 = vrcp.f32 %v558_v37  ;;  %v555_v38 = vpop.xlane.xlu0 %554 }
 0x6ea   :  { %2155 = vrcp.f32 %v555_v38 }
 0x6ec   :  { %v2117_v40 = vpop.permute.xlu1 %2116 }
 0x6ed   :  { %v2112_v43 = vpop.permute.xlu0 %2111  ;;  %v2119_v44 = vunpack.i.h.bf16 %v2117_v40  ;;  %v2118_v45 = vunpack.i.l.bf16 %v2117_v40 }
 0x6ee   :  { %v2114_v47 = vunpack.i.h.bf16 %v2112_v43  ;;  %v2113_v50 = vunpack.i.l.bf16 %v2112_v43 }
 0x6ef   :  { %v2032_v53 = vpack.c.bf16 %v2119_v44, %v2118_v45 }
 0x6f0   :  { %v2028_v51 = vpack.c.bf16 %v2114_v47, %v2113_v50  ;;  %v814_v52 = vpop.permute.xlu1 %813 }
 0x6f1   :  { %v816_v60 = vpop.permute.xlu0 %815 }
 0x6f2   :  { %2029 = vmatprep.subr.bf16.mxu0 %v2028_v51 }
 0x6f3   :  { %v2154_v54 = vpop.eup %2153  ;;  %2031 = vmatpush3.bf16.msra.mxu0 %v2028_v51 }
 0x6f4   :  { %v2156_v55 = vpop.eup %2155  ;;  %v2122_v39 = vpop.permute.xlu1 %2121  ;;  %2034 = vmatprep.subr.msk.bf16.mxu0 %vm2346_vm6, %v2032_v53  ;;  %v562_v56 = vmul.f32 %v2154_v54, %v2150_v33 }
 0x6f5   :  { %v561_v41 = vmul.f32 %v2156_v55, %v2152_v34  ;;  %v2124_v57 = vunpack.i.h.bf16 %v2122_v39  ;;  %v2123_v58 = vunpack.i.l.bf16 %v2122_v39  ;;  %v1098_v61 = vpop.permute.xlu0 %1097 }
 0x6f7   :  { %1904 = vmatprep.mubr.msk.f32.mxu0 %vm339_vm7, %v561_v41  ;;  %v2042_v59 = vpack.c.bf16 %v2124_v57, %v2123_v58  ;;  %v1297_v58 = vld [vmem:[#allocation2 + $0x40] sm:$0xff] }
 0x6f8   :  { %1905 = vmatmul.mubr.msk.f32.vlgmr.msra.gmra.mrb[2].mxu0 %vm339_vm7, %v562_v56  ;;  %v1100_v62 = vpop.permute.xlu1 %1099 }
 0x6f9   :  { %1921 = vmatprep.mubr.msk.f32.mxu0 %vm255_vm5, %v814_v52 }
 0x6fc   :  { %2037 = vmatpush3.bf16.xpose.msk.msra.mxu0 %vm2346_vm6, %v2032_v53 }
 0x6fd   :  { %2044 = vmatprep.subr.msk.bf16.mxu0 %vm2346_vm6, %v2042_v59 }
 0x703   :  { %1922 = vmatmul.mubr.msk.f32.vlgmr.msra.gmra.mrb[4].mxu0 %vm255_vm5, %v816_v60  ;;  %v35_v60 = vld [vmem:[#allocation2 + $0x50] sm:$0xff] }
 0x704   :  { %2047 = vmatpush3.bf16.xpose.msk.msra.mxu0 %vm2346_vm6, %v2042_v59  ;;  %1940 = vmatprep.mubr.msk.f32.mxu0 %vm255_vm5, %v1098_v61  ;;  %v36_v61 = vld [vmem:[#allocation2 + $0x58] sm:$0xff] }
 0x70b   :  { %1941 = vmatmul.mubr.msk.f32.vlgmr.msra.gmra.mrb[6].mxu0 %vm255_vm5, %v1100_v62  ;;  %v2052_v62 = vpack.c.bf16 %v36_v61, %v35_v60 }
 0x70d   :  { %2053 = vmatprep.subr.bf16.mxu0 %v2052_v62 }
 0x70e   :  { %2055 = vmatpush3.bf16.msra.mxu0 %v2052_v62  ;;  %v47_v62 = vld [vmem:[#allocation2 + $0xb0] sm:$0x3] }
 0x7cb   :  { %v1906_v1 = vpop.f32.mrb[2].mxu0 }
 0x7cc   :  { %v641_v2 = vpop.f32.mrb[3].mxu0 }
 0x7cd   :  { %1909 = vmatprep.mubr.msk.f32.mxu1 %vm255_vm5, %v641_v2  ;;  %v38_v2 = vld [vmem:[#allocation2 + $0x68] sm:$0xff] }
 0x7ce   :  { %1910 = vmatmul.mubr.msk.f32.vlgmr.msra.gmra.mrb[8].mxu1 %vm255_vm5, %v1906_v1  ;;  %v37_v1 = vld [vmem:[#allocation2 + $0x60] sm:$0xff] }
 0x7cf   :  { %1914 = vmatprep.mubr.msk.f32.mxu1 %vm255_vm5, %v2380_v19  ;;  %1913 = vmatpush3.msra.mxu1 %v449_v0 }
 0x7d6   :  { %1915 = vmatmul.mubr.msk.f32.vlgmr.msra.gmra.mrb[8].mxu1 %vm255_vm5, %v2378_v18  ;;  %v1923_v46 = vpop.f32.mrb[4].mxu0 }
 0x7d7   :  { %v901_v3 = vadd.f32 %v1923_v46, %v2356_v48  ;;  %v895_v4 = vpop.f32.mrb[5].mxu0  ;;  %v2056_v46 = vpack.c.bf16 %v38_v2, %v37_v1 }
 0x7d8   :  { %v896_v5 = vadd.f32 %v895_v4, %v2358_v49 }
 0x7d9   :  { %v907_v6 = vsel %vm339_vm7, %v901_v3, -inf  ;;  %2057 = vmatprep.subr.bf16.mxu0 %v2056_v46 }
 0x7da   :  { %908 = vmax.xlane.f32.xlu1 %v907_v6  ;;  %v904_v7 = vsel %vm339_vm7, %v896_v5, -inf  ;;  %2059 = vmatpush3.bf16.msra.mxu0 %v2056_v46 }
 0x7db   :  { %905 = vmax.xlane.f32.xlu0 %v904_v7 }
 0x7de   :  { %v1942_v8 = vpop.f32.mrb[6].mxu0 }
 0x7df   :  { %v1179_v9 = vpop.f32.mrb[7].mxu0  ;;  %v1185_v24 = vadd.f32 %v1942_v8, %v2356_v48  ;;  %v40_v8 = vld [vmem:[#allocation2 + $0x78] sm:$0xff] }
 0x7e1   :  { %v1191_v26 = vsel %vm339_vm7, %v1185_v24, -inf }
 0x7eb   :  { %2126 = vrot.lane.b32.xlu1 %v2341_v42, %s2245_s7 }
 0x7ef   :  { %2131 = vrot.lane.b32.xlu1 %v2341_v42, %s2246_s8  ;;  %v1180_v42 = vadd.f32 %v1179_v9, %v2358_v49  ;;  %v41_v9 = vld [vmem:[#allocation2 + $0x80] sm:$0xff] }
 0x7f1   :  { %v1188_v25 = vsel %vm339_vm7, %v1180_v42, -inf }
 0x867   :  { %v909_v10 = vpop.xlane.xlu1 %908 }
 0x868   :  { %v911_v11 = vsub.f32 %v901_v3, %v909_v10  ;;  %v906_v12 = vpop.xlane.xlu0 %905  ;;  %v1751_v3 = vld [vmem:[#allocation2 + $0x48] ss:$0 sm:$0xff]  ;;  %v2060_v10 = vpack.c.bf16 %v41_v9, %v40_v8 }
 0x869   :  { %v910_v13 = vsub.f32 %v896_v5, %v906_v12 }
 0x86a   :  { %v914_v14 = vmul.f32 1.442695, %v911_v11  ;;  %v1752_v11 = vld [vmem:[#allocation2 + $0x70] ss:$0 sm:$0xff] }
 0x86b   :  { %v912_v15 = vmul.f32 1.442695, %v910_v13  ;;  %v2127_v16 = vpop.permute.xlu1 %2126 }
 0x86c   :  { %v2129_v17 = vunpack.i.h.bf16 %v2127_v16  ;;  %v2128_v18 = vunpack.i.l.bf16 %v2127_v16  ;;  %v1755_v16 = vld [vmem:[#allocation2 + $0x88] ss:$0 sm:$0xff] }
 0x86d   :  { %2157 = vpow2.f32 %v912_v15 }
 0x86e   :  { %v2038_v19 = vpack.c.bf16 %v2129_v17, %v2128_v18  ;;  %2159 = vpow2.f32 %v914_v14 }
 0x86f   :  { %v2132_v33 = vpop.permute.xlu1 %2131 }
 0x870   :  { %2039 = vmatprep.subr.bf16.mxu1 %v2038_v19  ;;  %v2134_v37 = vunpack.i.h.bf16 %v2132_v33  ;;  %v2133_v38 = vunpack.i.l.bf16 %v2132_v33 }
 0x871   :  { %2041 = vmatpush3.bf16.msra.mxu1 %v2038_v19 }
 0x872   :  { %1931 = vmatprep.subr.mxu1 %v1013_v27  ;;  %v2048_v45 = vpack.c.bf16 %v2134_v37, %v2133_v38 }
 0x877   :  { %v2158_v20 = vpop.eup %2157 }
 0x878   :  { %v916_v21 = vsel %vm339_vm7, %v2158_v20, 0.0  ;;  %v2160_v22 = vpop.eup %2159 }
 0x879   :  { %917 = vadd.xlane.f32.xlu0 %v916_v21  ;;  %v919_v23 = vsel %vm339_vm7, %v2160_v22, 0.0  ;;  %v1758_v21 = vld [vmem:[#allocation2 + $0x90] ss:$0 sm:$0xff] }
 0x87d   :  { %920 = vadd.xlane.f32.xlu0 %v919_v23 }
 0x881   :  { %1189 = vmax.xlane.f32.xlu0 %v1188_v25 }
 0x885   :  { %1192 = vmax.xlane.f32.xlu0 %v1191_v26 }
 0x906   :  { %v918_v28 = vpop.xlane.xlu0 %917 }
 0x907   :  { %2161 = vrcp.f32 %v918_v28 }
 0x90a   :  { %v921_v29 = vpop.xlane.xlu0 %920 }
 0x90b   :  { %2163 = vrcp.f32 %v921_v29 }
 0x90e   :  { %v1190_v30 = vpop.xlane.xlu0 %1189 }
 0x90f   :  { %v1194_v32 = vsub.f32 %v1180_v42, %v1190_v30 }
 0x911   :  { %v2162_v49 = vpop.eup %2161  ;;  %v1196_v34 = vmul.f32 1.442695, %v1194_v32 }
 0x912   :  { %v1193_v35 = vpop.xlane.xlu0 %1192  ;;  %v924_v36 = vmul.f32 %v2162_v49, %v2158_v20 }
 0x913   :  { %2165 = vpow2.f32 %v1196_v34  ;;  %v1195_v48 = vsub.f32 %v1185_v24, %v1193_v35 }
 0x914   :  { %1928 = vmatprep.mubr.msk.f32.mxu1 %vm339_vm7, %v924_v36 }
 0x915   :  { %v2164_v40 = vpop.eup %2163  ;;  %v1198_v43 = vmul.f32 1.442695, %v1195_v48 }
 0x916   :  { %v925_v44 = vmul.f32 %v2164_v40, %v2160_v22 }
 0x917   :  { %2167 = vpow2.f32 %v1198_v43 }
 0x918   :  { %1929 = vmatmul.mubr.msk.f32.vlgmr.msra.gmra.mrb[10].mxu1 %vm339_vm7, %v925_v44 }
 0x919   :  { %1932 = vmatpush3.msra.mxu1 %v1013_v27  ;;  %v1759_v27 = vld [vmem:[#allocation2 + $0x98] ss:$0 sm:$0xff] }
 0x91a   :  { %2049 = vmatprep.subr.bf16.mxu1 %v2048_v45 }
 0x91d   :  { %v2166_v47 = vpop.eup %2165 }
 0x91e   :  { %v1200_v50 = vsel %vm339_vm7, %v2166_v47, 0.0 }
 0x91f   :  { %1201 = vadd.xlane.f32.xlu0 %v1200_v50 }
 0x921   :  { %v2168_v51 = vpop.eup %2167 }
 0x922   :  { %v1203_v52 = vsel %vm339_vm7, %v2168_v51, 0.0 }
 0x923   :  { %1204 = vadd.xlane.f32.xlu0 %v1203_v52 }
 0x9ac   :  { %v1202_v53 = vpop.xlane.xlu0 %1201 }
 0x9ad   :  { %2169 = vrcp.f32 %v1202_v53  ;;  %v2248_v53 = vmov 0.0|0.0  }
 0x9ae   :  { %2064 = vmatprep.subr.bf16.mxu0 %v2248_v53 }
 0x9b0   :  { %v1205_v54 = vpop.xlane.xlu0 %1204 }
 0x9b1   :  { %2171 = vrcp.f32 %v1205_v54 }
 0x9b7   :  { %v2170_v55 = vpop.eup %2169 }
 0x9b8   :  { %v1208_v57 = vmul.f32 %v2170_v55, %v2166_v47 }
 0x9bb   :  { %v2172_v56 = vpop.eup %2171 }
 0x9bc   :  { %v1209_v59 = vmul.f32 %v2172_v56, %v2168_v51 }
 0x9eb   :  { %v1930_v39 = vpop.f32.mrb[10].mxu1 }
 0x9ec   :  { %v1004_v41 = vpop.f32.mrb[11].mxu1 }
 0x9ed   :  { %1933 = vmatprep.mubr.msk.f32.mxu1 %vm255_vm5, %v1004_v41 }
 0x9ee   :  { %1934 = vmatmul.mubr.msk.f32.vlgmr.msra.gmra.mrb[8].mxu1 %vm255_vm5, %v1930_v39 }
 0x9ef   :  { %2051 = vmatpush3.bf16.msra.mxu1 %v2048_v45  ;;  %1947 = vmatprep.mubr.msk.f32.mxu1 %vm339_vm7, %v1208_v57 }
 0x9f0   :  { %1950 = vmatprep.subr.mxu1 %v1297_v58 }
 0x9f2   :  { %1948 = vmatmul.mubr.msk.f32.vlgmr.msra.gmra.mrb[12].mxu1 %vm339_vm7, %v1209_v59 }
 0x9f3   :  { %1951 = vmatpush3.msra.mxu1 %v1297_v58 }
 0x9f4   :  { %2061 = vmatprep.subr.bf16.mxu1 %v2060_v10 }
 0xac5   :  { %v1949_v63 = vpop.f32.mrb[12].mxu1 }
 0xac6   :  { %v1288_v0 = vpop.f32.mrb[13].mxu1 }
 0xac7   :  { %1952 = vmatprep.mubr.msk.f32.mxu1 %vm255_vm5, %v1288_v0 }
 0xac8   :  { %1953 = vmatmul.mubr.msk.f32.vlgmr.msra.gmra.mrb[8].mxu1 %vm255_vm5, %v1949_v63  ;;  %v2250_v63 = vmov 16  }
 0xac9   :  { %2063 = vmatpush3.bf16.msra.mxu1 %v2060_v10 }
 0xb9b   :  { %v1954_v4 = vpop.f32.mrb[8].mxu1 }
 0xb9c   :  { %v1370_v5 = vpop.f32.mrb[9].mxu1  ;;  %v1386_v7 = vadd.f32 %v1954_v4, %v1751_v3 }
 0xb9d   :  { %v1385_v6 = vadd.f32 %v1751_v3, %v1370_v5 }
 0xb9f   :  { %1963 = vmatprep.mubr.msk.f32.mxu0 %vm167_vm4, %v1385_v6 }
 0xba0   :  { %1964 = vmatmul.mubr.msk.f32.vlgmr.msra.gmra.mrb[8].mxu0 %vm167_vm4, %v1386_v7 }
 0xba1   :  { %1977 = vmatprep.mubr.msk.f32.mxu0 %vm2249_vm10, %v2235_v31 }
 0xc73   :  { %v1965_v12 = vpop.f32.mrb[8].mxu0 }
 0xc74   :  { %v1463_v13 = vpop.f32.mrb[9].mxu0  ;;  %v1469_v15 = vadd.f32 %v1965_v12, %v1752_v11 }
 0xc75   :  { %v1464_v14 = vadd.f32 %v1752_v11, %v1463_v13 }
 0xc77   :  { %1970 = vmatprep.mubr.msk.f32.mxu1 %vm339_vm7, %v1464_v14 }
 0xc78   :  { %1971 = vmatmul.mubr.msk.f32.vlgmr.msra.gmra.mrb[14].mxu1 %vm339_vm7, %v1469_v15 }
 0xd4b   :  { %v1972_v17 = vpop.f32.mrb[14].mxu1 }
 0xd4c   :  { %v1554_v18 = vadd.f32 %v1972_v17, %v1755_v16  ;;  %v1548_v19 = vpop.f32.mrb[15].mxu1 }
 0xd4d   :  { %v1549_v20 = vadd.f32 %v1755_v16, %v1548_v19 }
 0xd4e   :  { %2173 = vtanh.f32 %v1554_v18 }
 0xd4f   :  { %2175 = vtanh.f32 %v1549_v20 }
 0xd58   :  { %v2174_v22 = vpop.eup %2173 }
 0xd59   :  { %v2176_v42 = vpop.eup %2175  ;;  %v1564_v23 = vmul.f32 %v2174_v22, %v1758_v21 }
 0xd5a   :  { %v1563_v24 = vmul.f32 %v2176_v42, %v1758_v21 }
 0xd5b   :  { %v1569_v25 = vsel %vm1565_vm8, %v1564_v23, 0.0 }
 0xd5c   :  { %1570 = vadd.xlane.f32.xlu1 %v1569_v25  ;;  %v1566_v26 = vsel %vm1565_vm8, %v1563_v24, 0.0 }
 0xd5d   :  { %1567 = vadd.xlane.f32.xlu0 %v1566_v26 }
 0xde9   :  { %v1571_v28 = vpop.xlane.xlu1 %1570 }
 0xdea   :  { %v1577_v29 = vadd.f32 %v1759_v27, %v1571_v28  ;;  %v1568_v30 = vpop.xlane.xlu0 %1567 }
 0xdeb   :  { %v1576_v32 = vadd.f32 %v1759_v27, %v1568_v30 }
 0xdec   :  { %v1580_v49 = vsel %vm1578_vm9, %v1577_v29, -inf }
 0xded   :  { %v1579_v33 = vsel %vm1578_vm9, %v1576_v32, -inf }
 0xdee   :  { %v1581_v34 = vmax.f32 %v1579_v33, %v1580_v49 }
 0xdf0   :  { %v1582_v35 = vrot.slane %v1581_v34, 4 }
 0xdf2   :  { %v1583_v36 = vmax.f32 %v1581_v34, %v1582_v35 }
 0xdf4   :  { %v1584_v48 = vrot.slane %v1583_v36, 2 }
 0xdf6   :  { %v1585_v37 = vmax.f32 %v1583_v36, %v1584_v48 }
 0xdf8   :  { %v1586_v38 = vrot.slane %v1585_v37, 1 }
 0xdfa   :  { %v1587_v40 = vmax.f32 %v1585_v37, %v1586_v38 }
 0xdfc   :  { %v1588_v43 = vsub.f32 %v1576_v32, %v1587_v40  ;;  %v1589_v44 = vsub.f32 %v1577_v29, %v1587_v40 }
 0xdfe   :  { %v1590_v45 = vmul.f32 1.442695, %v1588_v43  ;;  %v1592_v47 = vmul.f32 1.442695, %v1589_v44 }
 0xe00   :  { %2177 = vpow2.f32 %v1590_v45 }
 0xe01   :  { %2179 = vpow2.f32 %v1592_v47 }
 0xe0a   :  { %v2178_v50 = vpop.eup %2177 }
 0xe0b   :  { %1596 = vperm.xlu0 %2094, %v2178_v50   ;;  %v2180_v51 = vpop.eup %2179 }
 0xe0c   :  { %v2135_v52 = vpack.i.bf16 %v2180_v51, %v2178_v50 }
 0xe0f   :  { %1601 = vperm.xlu0 %2094, %v2180_v51  }
 0xe13   :  { %2136 = vrot.lane.b32.xlu0 %v2135_v52, %s2247_s9 }
 0xe14   :  { %2140 = vset.pattern.permute.xlu0 %v2250_v63 }
 0xe8a   :  { %v1597_v54 = vpop.permute.xlu0 %1596 }
 0xe8b   :  { %v1604_v41 = vmul.f32 %v1597_v54, %v1464_v14 }
 0xe8e   :  { %v1602_v55 = vpop.permute.xlu0 %1601 }
 0xe8f   :  { %v1605_v56 = vmul.f32 %v1602_v55, %v1469_v15 }
 0xe92   :  { %v2137_v39 = vpop.permute.xlu0 %2136 }
 0xe93   :  { %v2139_v57 = vunpack.i.h.bf16 %v2137_v39  ;;  %v2138_v58 = vunpack.i.l.bf16 %v2137_v39 }
 0xe95   :  { %v1613_v59 = vsel %vm339_vm7, %v1605_v56, %v2139_v57  ;;  %v1612_v60 = vsel %vm339_vm7, %v1604_v41, %v2138_v58 }
 0xe96   :  { %v2065_v61 = vpack.c.bf16 %v1613_v59, %v1612_v60 }
 0xe98   :  { %2066 = vmatpush3.bf16.msra.mxu0 %v2065_v61 }
 0xe9b   :  { %1978 = vmatmul.mubr.msk.f32.vlgmr.msra.gmra.mrb[10].mxu0 %vm339_vm7, %v47_v62 }
 0xf6e   :  { %v1683_v0 = vpop.f32.mrb[10].mxu0 }
 0xf6f   :  { %2181 = vrcp.f32 %v1683_v0  ;;  %v1979_v31 = vpop.f32.mrb[11].mxu0 }
 0xf79   :  { %v2182_v1 = vpop.eup %2181 }
 0xf7a   :  { %1690 = vperm.xlu0 %2140, %v2182_v1  }
 0xff9   :  { %v1691_v2 = vpop.permute.xlu0 %1690 }
 0xffa   :  { %v1693_v46 = vmul.f32 %v1691_v2, %v1683_v0 }
 0xffc   :  { %1695 = vst.msk [vmem:[#allocation5] sm:$0x3] %vm1694_vm11, %v1693_v46 }
 0xffd   :  { %2216 = shalt.err (!%p2213_p12)
}
 0xffe   :  { %s2217_s15 = scalar_lea.hbm %s2460_s3, 32 }
 0xfff   :  { %p2218_p13 = scmp.ne.s32.totalorder %s2460_s3, %s2217_s15  ;;  %p2221_p0 = scmp.lt.u32.totalorder %s2217_s15, %s2460_s3 }
0x1001   :  { %p2223_p1 = pnand %p2221_p0, %p2218_p13 }
0x1003   :  { %2226 = shalt.err (!%p2223_p1)
}
0x1004   :  { %1705 = dma.vmem_to_hbm [thread:$0]  %s1703_s11, 32, %s2460_s3, [#allocation4]  }
0x1005   :  { %2229 = dma.done.wait [#allocation4], 32  }
0x1006   :  { %2230 = vsyncadd [#allocation4], 4294967264 }
0x1007   :  { %1709 = vsyncpa [#allocation3], 1 }
0x1008   :  { %1710 = vsyncpa [#allocation4], 1 }

</bundles_post_ra>
